<compile_context>
chip_gen: v7x
topology: tpu7x:2x2x1
jax: 0.10.0
libtpu: 0.0.40
codegen_flags: <defaults>
</compile_context>

<pallas_src>
import numpy as np
import jax
import jax.numpy as jnp
from jax import lax
from jax.experimental import pallas as pl
from jax.experimental.pallas import tpu as pltpu


def _masked_edge_attn_kernel(m_ref, w_ref, maskc_ref, out_ref):
    # m_ref:     (Bt, S, D)       block of dialogues' utterance features
    # w_ref:     (L_blk, D)       scalar-projection weight, native nn.Linear layout
    # maskc_ref: (Bt, L_blk, S)   int8: 1 at edge positions (j,u,v), 0 elsewhere
    # out_ref:   (Bt, L_blk, S)   f32 edge scores
    bt = m_ref.shape[0]
    w = w_ref[...]                                   # (L_blk, D)
    dn = (((1,), (1,)), ((), ()))                    # contract over D; no transposes
    for b in range(bt):                              # bt is a compile-time constant
        # scale^T: (L_blk, S) computed natively by the MXU (= W @ M_b^T)
        scale = lax.dot_general(w, m_ref[b], dn,
                                preferred_element_type=jnp.float32)
        # softmax over the sequence axis (== dim 0 of the PyTorch (S,B,L) tensor)
        mx = jnp.max(scale, axis=-1, keepdims=True)
        e = jnp.exp(scale - mx)
        # EUP approx reciprocal: the per-row factor cancels exactly in the edge
        # renormalization below, so it costs no accuracy and frees VALU slots.
        alpha = e * pl.reciprocal(jnp.sum(e, axis=-1, keepdims=True), approx=True)

        maskc = maskc_ref[b].astype(jnp.float32)     # (L_blk, S): 1.0 at edges
        # mask (1e-10 background, 1.0 at edges) derived in-kernel; bit-exact in f32
        # vs. streaming a second dense mask tensor. Keeps the 1e-10 floor so `sums`
        # is never 0 (no NaN even for rows with no edges).
        masked = alpha * (maskc + jnp.float32(1e-10))
        sums = jnp.sum(masked, axis=-1, keepdims=True)   # >= ~1e-10
        inv = pl.reciprocal(sums, approx=True)
        inv = inv * (2.0 - sums * inv)               # one Newton step -> ~f32 exact
        out_ref[b] = (masked * inv * maskc).astype(out_ref.dtype)


def masked_edge_attention(M, W, edge_ind, max_seq_len, *,
                          block_batch=8, block_l=None, use_bf16_matmul=False):
    """
    M        : (seq_len, batch, input_dim)  float32
    W        : (max_seq_len, input_dim)     float32  (nn.Linear(input_dim, max_seq_len, bias=False))
    edge_ind : list (per dialogue) of (u, v) tuples
    returns  : (batch, max_seq_len, seq_len) float32
    """
    S, B, D = M.shape
    L = int(max_seq_len)

    # ---- host-side glue: layout + dense int8 edge mask (data-dependent scatter) ----
    M_b = jnp.transpose(M, (1, 0, 2))               # (B, S, D), batch-major for the grid
    W_in = W                                        # native (L, D); no transpose needed

    mask_copy_np = np.zeros((B, L, S), dtype=np.int8)
    for j, perms in enumerate(edge_ind):
        for (u, v) in perms:
            mask_copy_np[j, u, v] = 1               # handles empty edge lists naturally
    mask_copy = jnp.asarray(mask_copy_np)

    if use_bf16_matmul:
        # Optional: halves M/W DMA bytes and uses fast bf16 MXU passes (introduces
        # ~1e-3 relative error in pre-softmax logits).
        M_b = M_b.astype(jnp.bfloat16)
        W_in = W_in.astype(jnp.bfloat16)

    # ---- batch blocking: pad B to a multiple of Bt (padded dialogues have an all-zero
    #      mask_copy -> zero scores; sliced off afterwards) ----
    bt = max(1, min(int(block_batch), B))
    pad = (-B) % bt
    if pad:
        M_b = jnp.pad(M_b, ((0, pad), (0, 0), (0, 0)))
        mask_copy = jnp.pad(mask_copy, ((0, pad), (0, 0), (0, 0)))
    Bp = B + pad

    # ---- optional L blocking (v7x VMEM headroom); only if it keeps blocks tile-aligned.
    #      Softmax/normalization reduce over S only, so L blocks are independent. ----
    if block_l is not None and 0 < block_l < L and L % block_l == 0 and block_l % 32 == 0:
        tile_l = int(block_l)
    else:
        tile_l = L

    itemsize = jnp.dtype(M_b.dtype).itemsize
    blk_bytes = (bt * S * D * itemsize          # M block
                 + tile_l * D * itemsize        # W block
                 + bt * tile_l * S * 1          # int8 mask block
                 + bt * tile_l * S * 4)         # f32 output block
    vmem_limit_bytes = int(max(32 * 2**20, min(4 * blk_bytes, 64 * 2**20)))

    # NOTE: a lane-dense (B, S, L) internal layout (with an XLA permute outside) was
    # considered but skipped: typical DialogueGCN S and L are both < 128 lanes.
    out = pl.pallas_call(
        _masked_edge_attn_kernel,
        out_shape=jax.ShapeDtypeStruct((Bp, L, S), jnp.float32),
        grid_spec=pltpu.PrefetchScalarGridSpec(
            num_scalar_prefetch=0,
            grid=(Bp // bt, L // tile_l),
            in_specs=[
                pl.BlockSpec((bt, S, D), lambda b, l: (b, 0, 0)),        # M (cached across l)
                pl.BlockSpec((tile_l, D), lambda b, l: (l, 0)),          # W, native layout
                pl.BlockSpec((bt, tile_l, S), lambda b, l: (b, l, 0)),   # int8 edge mask
            ],
            out_specs=pl.BlockSpec((bt, tile_l, S), lambda b, l: (b, l, 0)),
        ),
        compiler_params=pltpu.CompilerParams(
            dimension_semantics=("parallel", "parallel"),
            vmem_limit_bytes=vmem_limit_bytes,
        ),
    )(M_b, W_in, mask_copy)
    return out[:B] if pad else out


def _reference(M, W, edge_ind, max_seq_len):
    # Pure-JAX reference mirroring the PyTorch code exactly.
    S, B, D = M.shape
    L = max_seq_len
    scale = jnp.einsum("sbd,ld->sbl", M, W)                    # (S, B, L)
    alpha = jax.nn.softmax(scale, axis=0)
    alpha = jnp.transpose(alpha, (1, 2, 0))                    # (B, L, S)
    mask = jnp.full_like(alpha, 1e-10)
    mask_copy = jnp.zeros_like(alpha)
    for j, perms in enumerate(edge_ind):
        for (u, v) in perms:
            mask = mask.at[j, u, v].set(1.0)
            mask_copy = mask_copy.at[j, u, v].set(1.0)
    masked_alpha = alpha * mask
    sums = masked_alpha.sum(-1, keepdims=True)
    return masked_alpha / sums * mask_copy


if __name__ == "__main__":
    # Small shapes consistent with the module's forward.
    seq_len, batch, input_dim, max_seq_len = 8, 2, 32, 16

    key = jax.random.PRNGKey(0)
    k_m, k_w = jax.random.split(key)
    M = jax.random.normal(k_m, (seq_len, batch, input_dim), dtype=jnp.float32)
    # Deterministic weight init for nn.Linear(input_dim, max_seq_len, bias=False).
    W = jax.random.uniform(
        k_w, (max_seq_len, input_dim), dtype=jnp.float32, minval=-0.1, maxval=0.1
    )

    # Edge indices per dialogue (u indexes rows < max_seq_len, v indexes cols < seq_len).
    edge_ind = [
        [(0, 1), (1, 2), (2, 0), (3, 3), (3, 5)],
        [(0, 0), (1, 3), (2, 1), (4, 4)],
    ]

    scores = masked_edge_attention(M, W, edge_ind, max_seq_len)
    scores = jax.block_until_ready(scores)

    ref = _reference(M, W, edge_ind, max_seq_len)
    assert scores.shape == (batch, max_seq_len, seq_len)
    assert jnp.allclose(scores, ref, atol=1e-5, rtol=1e-5), "mismatch vs reference"

    print("KERNEL_OK")
</pallas_src>

<mosaic_0001>
module attributes {stable_mosaic.version = 11 : i64} {
  func.func @_masked_edge_attn_kernel(%arg0: i32, %arg1: i32, %arg2: memref<2x8x32xf32, #tpu.memory_space<vmem>>, %arg3: memref<16x32xf32, #tpu.memory_space<vmem>>, %arg4: memref<2x16x8xi8, #tpu.memory_space<vmem>>, %arg5: memref<2x16x8xf32, #tpu.memory_space<vmem>>) attributes {dimension_semantics = [#tpu.dimension_semantics<parallel>, #tpu.dimension_semantics<parallel>], iteration_bounds = array<i64: 1, 1>, scalar_prefetch = 0 : i64, scratch_operands = 0 : i64, tpu.core_type = #tpu.core_type<tc>, window_params = [{transform_indices = @transform_0, window_bounds = array<i64: 2, 8, 32>}, {transform_indices = @transform_1, window_bounds = array<i64: 16, 32>}, {transform_indices = @transform_2, window_bounds = array<i64: 2, 16, 8>}, {transform_indices = @transform_3, window_bounds = array<i64: 2, 16, 8>}]} {
    %c0 = arith.constant 0 : index
    %c0_0 = arith.constant 0 : index
    %0 = vector.load %arg3[%c0, %c0_0] : memref<16x32xf32, #tpu.memory_space<vmem>>, vector<16x32xf32>
    %c0_1 = arith.constant 0 : index
    %c0_2 = arith.constant 0 : index
    %c0_3 = arith.constant 0 : index
    %1 = vector.load %arg2[%c0_1, %c0_2, %c0_3] : memref<2x8x32xf32, #tpu.memory_space<vmem>>, vector<1x8x32xf32>
    %2 = vector.shape_cast %1 : vector<1x8x32xf32> to vector<8x32xf32>
    %cst = arith.constant dense<0.000000e+00> : vector<16x8xf32>
    %3 = tpu.matmul %0, %2, %cst {dimension_numbers = #tpu.dot_dimension_numbers<[1], [1], [0], [0], [0, 0, 1, 0], [], []>} : vector<16x32xf32>, vector<8x32xf32>, vector<16x8xf32> -> vector<16x8xf32>
    %cst_4 = arith.constant dense<0xFF800000> : vector<16xf32>
    %4 = vector.multi_reduction <maximumf>, %3, %cst_4 [1] : vector<16x8xf32> to vector<16xf32>
    %5 = vector.shape_cast %4 : vector<16xf32> to vector<16x1xf32>
    %6 = vector.broadcast %5 : vector<16x1xf32> to vector<16x8xf32>
    %7 = arith.subf %3, %6 : vector<16x8xf32>
    %8 = math.exp %7 : vector<16x8xf32>
    %cst_5 = arith.constant dense<0.000000e+00> : vector<16xf32>
    %9 = vector.multi_reduction <add>, %8, %cst_5 [1] : vector<16x8xf32> to vector<16xf32>
    %10 = vector.shape_cast %9 : vector<16xf32> to vector<16x1xf32>
    %11 = tpu.reciprocal %10 {approx = true} : vector<16x1xf32> -> vector<16x1xf32>
    %12 = vector.broadcast %11 : vector<16x1xf32> to vector<16x8xf32>
    %13 = arith.mulf %8, %12 : vector<16x8xf32>
    %c0_6 = arith.constant 0 : index
    %c0_7 = arith.constant 0 : index
    %c0_8 = arith.constant 0 : index
    %14 = vector.load %arg4[%c0_6, %c0_7, %c0_8] : memref<2x16x8xi8, #tpu.memory_space<vmem>>, vector<1x16x8xi8>
    %15 = vector.shape_cast %14 : vector<1x16x8xi8> to vector<16x8xi8>
    %16 = arith.sitofp %15 : vector<16x8xi8> to vector<16x8xf32>
    %cst_9 = arith.constant 1.000000e-10 : f32
    %17 = vector.broadcast %cst_9 : f32 to vector<16x8xf32>
    %18 = arith.addf %16, %17 : vector<16x8xf32>
    %19 = arith.mulf %13, %18 : vector<16x8xf32>
    %cst_10 = arith.constant dense<0.000000e+00> : vector<16xf32>
    %20 = vector.multi_reduction <add>, %19, %cst_10 [1] : vector<16x8xf32> to vector<16xf32>
    %21 = vector.shape_cast %20 : vector<16xf32> to vector<16x1xf32>
    %22 = tpu.reciprocal %21 {approx = true} : vector<16x1xf32> -> vector<16x1xf32>
    %23 = arith.mulf %21, %22 : vector<16x1xf32>
    %cst_11 = arith.constant 2.000000e+00 : f32
    %24 = vector.broadcast %cst_11 : f32 to vector<16x1xf32>
    %25 = arith.subf %24, %23 : vector<16x1xf32>
    %26 = arith.mulf %22, %25 : vector<16x1xf32>
    %27 = vector.broadcast %26 : vector<16x1xf32> to vector<16x8xf32>
    %28 = arith.mulf %19, %27 : vector<16x8xf32>
    %29 = arith.mulf %28, %16 : vector<16x8xf32>
    %c0_12 = arith.constant 0 : index
    %c0_13 = arith.constant 0 : index
    %c0_14 = arith.constant 0 : index
    %30 = vector.load %arg5[%c0_12, %c0_13, %c0_14] : memref<2x16x8xf32, #tpu.memory_space<vmem>>, vector<1x16x8xf32>
    %31 = vector.shape_cast %30 : vector<1x16x8xf32> to vector<16x8xf32>
    %32 = vector.shape_cast %29 : vector<16x8xf32> to vector<1x16x8xf32>
    tpu.vector_store %arg5[%c0_12, %c0_13, %c0_14], %32 {strides = array<i32>} : memref<2x16x8xf32, #tpu.memory_space<vmem>>, vector<1x16x8xf32>,
    %c1 = arith.constant 1 : index
    %c0_15 = arith.constant 0 : index
    %c0_16 = arith.constant 0 : index
    %33 = vector.load %arg2[%c1, %c0_15, %c0_16] : memref<2x8x32xf32, #tpu.memory_space<vmem>>, vector<1x8x32xf32>
    %34 = vector.shape_cast %33 : vector<1x8x32xf32> to vector<8x32xf32>
    %cst_17 = arith.constant dense<0.000000e+00> : vector<16x8xf32>
    %35 = tpu.matmul %0, %34, %cst_17 {dimension_numbers = #tpu.dot_dimension_numbers<[1], [1], [0], [0], [0, 0, 1, 0], [], []>} : vector<16x32xf32>, vector<8x32xf32>, vector<16x8xf32> -> vector<16x8xf32>
    %cst_18 = arith.constant dense<0xFF800000> : vector<16xf32>
    %36 = vector.multi_reduction <maximumf>, %35, %cst_18 [1] : vector<16x8xf32> to vector<16xf32>
    %37 = vector.shape_cast %36 : vector<16xf32> to vector<16x1xf32>
    %38 = vector.broadcast %37 : vector<16x1xf32> to vector<16x8xf32>
    %39 = arith.subf %35, %38 : vector<16x8xf32>
    %40 = math.exp %39 : vector<16x8xf32>
    %cst_19 = arith.constant dense<0.000000e+00> : vector<16xf32>
    %41 = vector.multi_reduction <add>, %40, %cst_19 [1] : vector<16x8xf32> to vector<16xf32>
    %42 = vector.shape_cast %41 : vector<16xf32> to vector<16x1xf32>
    %43 = tpu.reciprocal %42 {approx = true} : vector<16x1xf32> -> vector<16x1xf32>
    %44 = vector.broadcast %43 : vector<16x1xf32> to vector<16x8xf32>
    %45 = arith.mulf %40, %44 : vector<16x8xf32>
    %c1_20 = arith.constant 1 : index
    %c0_21 = arith.constant 0 : index
    %c0_22 = arith.constant 0 : index
    %46 = vector.load %arg4[%c1_20, %c0_21, %c0_22] : memref<2x16x8xi8, #tpu.memory_space<vmem>>, vector<1x16x8xi8>
    %47 = vector.shape_cast %46 : vector<1x16x8xi8> to vector<16x8xi8>
    %48 = arith.sitofp %47 : vector<16x8xi8> to vector<16x8xf32>
    %cst_23 = arith.constant 1.000000e-10 : f32
    %49 = vector.broadcast %cst_23 : f32 to vector<16x8xf32>
    %50 = arith.addf %48, %49 : vector<16x8xf32>
    %51 = arith.mulf %45, %50 : vector<16x8xf32>
    %cst_24 = arith.constant dense<0.000000e+00> : vector<16xf32>
    %52 = vector.multi_reduction <add>, %51, %cst_24 [1] : vector<16x8xf32> to vector<16xf32>
    %53 = vector.shape_cast %52 : vector<16xf32> to vector<16x1xf32>
    %54 = tpu.reciprocal %53 {approx = true} : vector<16x1xf32> -> vector<16x1xf32>
    %55 = arith.mulf %53, %54 : vector<16x1xf32>
    %cst_25 = arith.constant 2.000000e+00 : f32
    %56 = vector.broadcast %cst_25 : f32 to vector<16x1xf32>
    %57 = arith.subf %56, %55 : vector<16x1xf32>
    %58 = arith.mulf %54, %57 : vector<16x1xf32>
    %59 = vector.broadcast %58 : vector<16x1xf32> to vector<16x8xf32>
    %60 = arith.mulf %51, %59 : vector<16x8xf32>
    %61 = arith.mulf %60, %48 : vector<16x8xf32>
    %c1_26 = arith.constant 1 : index
    %c0_27 = arith.constant 0 : index
    %c0_28 = arith.constant 0 : index
    %62 = vector.load %arg5[%c1_26, %c0_27, %c0_28] : memref<2x16x8xf32, #tpu.memory_space<vmem>>, vector<1x16x8xf32>
    %63 = vector.shape_cast %62 : vector<1x16x8xf32> to vector<16x8xf32>
    %64 = vector.shape_cast %61 : vector<16x8xf32> to vector<1x16x8xf32>
    tpu.vector_store %arg5[%c1_26, %c0_27, %c0_28], %64 {strides = array<i32>} : memref<2x16x8xf32, #tpu.memory_space<vmem>>, vector<1x16x8xf32>,
    return
  }
  func.func @transform_0(%arg0: i32, %arg1: i32) -> (i32, i32, i32) {
    %c0_i32 = arith.constant 0 : i32
    %c0_i32_0 = arith.constant 0 : i32
    %c0_i32_1 = arith.constant 0 : i32
    return %arg0, %c0_i32, %c0_i32_0 : i32, i32, i32
  }
  func.func @transform_1(%arg0: i32, %arg1: i32) -> (i32, i32) {
    %c0_i32 = arith.constant 0 : i32
    %c0_i32_0 = arith.constant 0 : i32
    return %arg1, %c0_i32 : i32, i32
  }
  func.func @transform_2(%arg0: i32, %arg1: i32) -> (i32, i32, i32) {
    %c0_i32 = arith.constant 0 : i32
    %c0_i32_0 = arith.constant 0 : i32
    return %arg0, %arg1, %c0_i32 : i32, i32, i32
  }
  func.func @transform_3(%arg0: i32, %arg1: i32) -> (i32, i32, i32) {
    %c0_i32 = arith.constant 0 : i32
    %c0_i32_0 = arith.constant 0 : i32
    return %arg0, %arg1, %c0_i32 : i32, i32, i32
  }
}

</mosaic_0001>

<bundles_post_ra>
// kernel: tpu_custom_call.1
= control target key start
LH: loop header
LB: loop body
LE: loop exit
PB: predicated region body
PF: predicated region fallthrough
CT: control target
= control target key end

     0   :  { %8 = vsyncpa [#allocation3], 0  ;;  %s513_s0 = inlined_call_operand.hbm [shape: f32[2,8,32], index: 0, kind: input, shape index: {}]   ;;  %s514_s1 = inlined_call_operand.hbm [shape: f32[16,32], index: 1, kind: input, shape index: {}]   ;;  %s515_s2 = inlined_call_operand.vmem [shape: s8[2,16,8], index: 2, kind: input, shape index: {}]   ;;  %s516_s3 = inlined_call_operand.vmem [shape: f32[2,16,8], index: 3, kind: output, shape index: {}]  }
   0x1   :  { %9 = vsyncpa [#allocation5], 0  ;;  %s434_s12 = smov [#allocation2]   ;;  %s386_s16 = scalar_lea.hbm %s513_s0, 256 }
   0x2   :  { %s15_s13 = sshll.u32 %s434_s12, 4  ;;  %p387_p0 = scmp.ne.s32.totalorder %s513_s0, %s386_s16  ;;  %s16_s13 = int_to_ptr.vmem [resolvable:$true] %s15_s13 }
   0x3   :  { %p390_p1 = scmp.lt.u32.totalorder %s386_s16, %s513_s0 }
   0x5   :  { %p392_p2 = pnand %p390_p1, %p387_p0 }
   0x7   :  { %395 = shalt.err (!%p392_p2)
}
   0x8   :  { %s396_s21 = scalar_lea.vmem %s16_s13, 256  ;;  %p401_p4 = scmp.lt.s32.totalorder %s16_s13, %s16_s13 }
   0x9   :  { %p397_p3 = scmp.ne.s32.totalorder %s16_s13, %s396_s21  ;;  %p402_p5 = scmp.lt.s32.totalorder %s396_s21, %s396_s21 }
   0xb   :  { %p403_p6 = por %p402_p5, %p401_p4 }
   0xd   :  { %p404_p7 = pnand %p403_p6, %p397_p3 }
   0xf   :  { %407 = shalt.err (!%p404_p7)
}
  0x10   :  { %s435_s22 = smov 128   ;;  %s436_s23 = smov 8  }
  0x11   :  { %21 = dma.hbm_to_vmem [thread:$0]  %s513_s0, 256, %s16_s13, [#allocation3], %s435_s22, %s435_s22, %s436_s23  }
  0x12   :  { %s437_s26 = smov [#allocation4]   ;;  %s408_s30 = scalar_lea.hbm %s514_s1, 256 }
  0x13   :  { %s27_s27 = sshll.u32 %s437_s26, 4  ;;  %p409_p8 = scmp.ne.s32.totalorder %s514_s1, %s408_s30  ;;  %s28_s27 = int_to_ptr.vmem [resolvable:$true] %s27_s27 }
  0x14   :  { %p412_p9 = scmp.lt.u32.totalorder %s408_s30, %s514_s1 }
  0x16   :  { %p414_p10 = pnand %p412_p9, %p409_p8 }
  0x18   :  { %417 = shalt.err (!%p414_p10)
}
  0x19   :  { %s418_s8 = scalar_lea.vmem %s28_s27, 256  ;;  %p423_p12 = scmp.lt.s32.totalorder %s28_s27, %s28_s27 }
  0x1a   :  { %p419_p11 = scmp.ne.s32.totalorder %s28_s27, %s418_s8  ;;  %p424_p13 = scmp.lt.s32.totalorder %s418_s8, %s418_s8 }
  0x1c   :  { %p425_p0 = por %p424_p13, %p423_p12 }
  0x1e   :  { %p426_p1 = pnand %p425_p0, %p419_p11 }
  0x20   :  { %429 = shalt.err (!%p426_p1)
}
  0x21   :  { %33 = dma.hbm_to_vmem [thread:$0]  %s514_s1, 256, %s28_s27, [#allocation5], %s435_s22, %s435_s22, %s436_s23  }
  0x22   :  { %430 = dma.done.wait [#allocation3], 256  }
  0x23   :  { %431 = vsyncadd [#allocation3], 4294967040 }
  0x24   :  { %432 = dma.done.wait [#allocation5], 256  }
  0x25   :  { %433 = vsyncadd [#allocation5], 4294967040  ;;  %vm45_vm0 = vcmask 261120   ;;  %v44_v0 = vld [vmem:[#allocation2] sm:$0xff]  ;;  %v184_v1 = vld [vmem:[#allocation2 + $0x8] sm:$0xff]  ;;  %vm130_vm1 = vcmask 64512  }
  0x26   :  { %v42_v2 = vld [vmem:[#allocation4] sm:$0xff]  ;;  %347 = vmatprep.subr.msk.mxu0 %vm45_vm0, %v44_v0  ;;  %352 = vmatprep.subr.msk.mxu1 %vm45_vm0, %v184_v1  ;;  %v43_v3 = vld [vmem:[#allocation4 + $0x8] sm:$0xff]  ;;  %v334_v32 = vld [vmem:[%s515_s2] sm:$0xff]  }
  0x27   :  { %348 = vmatpush3.xpose.msk.msra.mxu0 %vm45_vm0, %v44_v0  ;;  %353 = vmatpush3.xpose.msk.msra.mxu1 %vm45_vm0, %v184_v1  ;;  %v335_v34 = vunpack.c.0.s8 %v334_v32  ;;  %v336_v38 = vunpack.c.1.s8 %v334_v32  ;;  %v339_v39 = vunpack.c.2.s8 %v334_v32  ;;  %v340_v43 = vunpack.c.3.s8 %v334_v32 }
  0x28   :  { %349 = vmatprep.mubr.msk.f32.mxu0 %vm45_vm0, %v42_v2  ;;  %354 = vmatprep.mubr.msk.f32.mxu1 %vm45_vm0, %v42_v2 }
  0x29   :  { %v157_v37 = vcvt.s32.f32 %v335_v34  ;;  %v158_v42 = vcvt.s32.f32 %v336_v38  ;;  %v290_v45 = vcvt.s32.f32 %v339_v39  ;;  %v291_v49 = vcvt.s32.f32 %v340_v43 }
  0x2a   :  { %350 = vmatmul.mubr.msk.f32.vlgmr.msra.gmra.mrb[0].mxu0 %vm45_vm0, %v43_v3  ;;  %355 = vmatmul.mubr.msk.f32.vlgmr.msra.gmra.mrb[0].mxu1 %vm45_vm0, %v43_v3 }
  0x2b   :  { %v159_v41 = vadd.f32 1e-10, %v157_v37  ;;  %v160_v48 = vadd.f32 1e-10, %v158_v42  ;;  %v292_v51 = vadd.f32 1e-10, %v290_v45 }
  0x2c   :  { %v293_v57 = vadd.f32 1e-10, %v291_v49 }
  0xfd   :  { %v351_v4 = vpop.f32.mrb[0].mxu0  ;;  %v356_v5 = vpop.f32.mrb[0].mxu1 }
  0xfe   :  { %v121_v6 = vpop.f32.mrb[1].mxu0  ;;  %v254_v7 = vpop.f32.mrb[1].mxu1  ;;  %v266_v10 = vsel %vm130_vm1, %v356_v5, -inf  ;;  %v134_v11 = vsel %vm130_vm1, %v351_v4, -inf }
  0xff   :  { %v263_v8 = vsel %vm130_vm1, %v254_v7, -inf  ;;  %v131_v9 = vsel %vm130_vm1, %v121_v6, -inf }
 0x100   :  { %264 = vmax.xlane.f32.xlu1 %v263_v8  ;;  %132 = vmax.xlane.f32.xlu0 %v131_v9 }
 0x104   :  { %267 = vmax.xlane.f32.xlu1 %v266_v10  ;;  %135 = vmax.xlane.f32.xlu0 %v134_v11 }
 0x18d   :  { %v265_v12 = vpop.xlane.xlu1 %264  ;;  %v133_v13 = vpop.xlane.xlu0 %132 }
 0x18e   :  { %v269_v14 = vsub.f32 %v254_v7, %v265_v12  ;;  %v137_v15 = vsub.f32 %v121_v6, %v133_v13 }
 0x190   :  { %v139_v16 = vmul.f32 1.442695, %v137_v15  ;;  %v271_v17 = vmul.f32 1.442695, %v269_v14 }
 0x191   :  { %v268_v18 = vpop.xlane.xlu1 %267  ;;  %v136_v19 = vpop.xlane.xlu0 %135 }
 0x192   :  { %v270_v20 = vsub.f32 %v356_v5, %v268_v18  ;;  %v138_v21 = vsub.f32 %v351_v4, %v136_v19  ;;  %362 = vpow2.f32 %v139_v16 }
 0x193   :  { %364 = vpow2.f32 %v271_v17 }
 0x194   :  { %v141_v22 = vmul.f32 1.442695, %v138_v21  ;;  %v273_v23 = vmul.f32 1.442695, %v270_v20 }
 0x196   :  { %366 = vpow2.f32 %v141_v22 }
 0x197   :  { %368 = vpow2.f32 %v273_v23 }
 0x19c   :  { %v363_v24 = vpop.eup %362 }
 0x19d   :  { %v143_v25 = vsel %vm130_vm1, %v363_v24, 0.0  ;;  %v365_v26 = vpop.eup %364 }
 0x19e   :  { %144 = vadd.xlane.f32.xlu0 %v143_v25  ;;  %v275_v28 = vsel %vm130_vm1, %v365_v26, 0.0 }
 0x1a0   :  { %v367_v27 = vpop.eup %366 }
 0x1a1   :  { %v146_v29 = vsel %vm130_vm1, %v367_v27, 0.0  ;;  %v369_v30 = vpop.eup %368 }
 0x1a2   :  { %276 = vadd.xlane.f32.xlu0 %v275_v28  ;;  %147 = vadd.xlane.f32.xlu1 %v146_v29  ;;  %v278_v31 = vsel %vm130_vm1, %v369_v30, 0.0 }
 0x1a6   :  { %279 = vadd.xlane.f32.xlu1 %v278_v31 }
 0x22b   :  { %v145_v33 = vpop.xlane.xlu0 %144 }
 0x22c   :  { %370 = vrcp.f32 %v145_v33 }
 0x22f   :  { %v148_v35 = vpop.xlane.xlu1 %147  ;;  %v277_v36 = vpop.xlane.xlu0 %276 }
 0x230   :  { %372 = vrcp.f32 %v148_v35 }
 0x231   :  { %374 = vrcp.f32 %v277_v36 }
 0x233   :  { %v280_v40 = vpop.xlane.xlu1 %279 }
 0x234   :  { %376 = vrcp.f32 %v280_v40 }
 0x236   :  { %v371_v44 = vpop.eup %370 }
 0x237   :  { %v151_v46 = vmul.f32 %v371_v44, %v363_v24 }
 0x239   :  { %v161_v47 = vmul.f32 %v159_v41, %v151_v46 }
 0x23a   :  { %v373_v50 = vpop.eup %372 }
 0x23b   :  { %v375_v52 = vpop.eup %374  ;;  %v163_v53 = vsel %vm130_vm1, %v161_v47, 0.0  ;;  %v152_v54 = vmul.f32 %v373_v50, %v367_v27 }
 0x23c   :  { %164 = vadd.xlane.f32.xlu0 %v163_v53  ;;  %v283_v55 = vmul.f32 %v375_v52, %v365_v26 }
 0x23d   :  { %v162_v56 = vmul.f32 %v160_v48, %v152_v54 }
 0x23e   :  { %v377_v58 = vpop.eup %376  ;;  %v294_v59 = vmul.f32 %v292_v51, %v283_v55 }
 0x23f   :  { %v166_v60 = vsel %vm130_vm1, %v162_v56, 0.0  ;;  %v284_v61 = vmul.f32 %v377_v58, %v369_v30 }
 0x240   :  { %167 = vadd.xlane.f32.xlu1 %v166_v60  ;;  %v296_v62 = vsel %vm130_vm1, %v294_v59, 0.0 }
 0x241   :  { %297 = vadd.xlane.f32.xlu0 %v296_v62  ;;  %v295_v63 = vmul.f32 %v293_v57, %v284_v61 }
 0x243   :  { %v299_v0 = vsel %vm130_vm1, %v295_v63, 0.0 }
 0x244   :  { %300 = vadd.xlane.f32.xlu1 %v299_v0 }
 0x2c9   :  { %v165_v1 = vpop.xlane.xlu0 %164 }
 0x2ca   :  { %378 = vrcp.f32 %v165_v1 }
 0x2cd   :  { %v168_v2 = vpop.xlane.xlu1 %167 }
 0x2ce   :  { %380 = vrcp.f32 %v168_v2  ;;  %v298_v3 = vpop.xlane.xlu0 %297 }
 0x2cf   :  { %382 = vrcp.f32 %v298_v3 }
 0x2d1   :  { %v301_v4 = vpop.xlane.xlu1 %300 }
 0x2d2   :  { %384 = vrcp.f32 %v301_v4 }
 0x2d4   :  { %v379_v5 = vpop.eup %378 }
 0x2d5   :  { %v171_v6 = vmul.f32 %v379_v5, %v165_v1 }
 0x2d7   :  { %v173_v7 = vsub.f32 2.0, %v171_v6 }
 0x2d8   :  { %v381_v8 = vpop.eup %380 }
 0x2d9   :  { %v383_v9 = vpop.eup %382  ;;  %v175_v10 = vmul.f32 %v379_v5, %v173_v7  ;;  %v172_v11 = vmul.f32 %v381_v8, %v168_v2 }
 0x2da   :  { %v304_v12 = vmul.f32 %v383_v9, %v298_v3 }
 0x2db   :  { %v177_v13 = vmul.f32 %v175_v10, %v161_v47  ;;  %v174_v14 = vsub.f32 2.0, %v172_v11 }
 0x2dc   :  { %v385_v15 = vpop.eup %384  ;;  %v306_v16 = vsub.f32 2.0, %v304_v12 }
 0x2dd   :  { %v179_v17 = vmul.f32 %v177_v13, %v157_v37  ;;  %v176_v18 = vmul.f32 %v381_v8, %v174_v14  ;;  %v305_v19 = vmul.f32 %v385_v15, %v301_v4 }
 0x2de   :  { %v308_v20 = vmul.f32 %v383_v9, %v306_v16 }
 0x2df   :  { %181 = vst.msk [vmem:[%s516_s3] sm:$0xff] %vm130_vm1, %v179_v17  ;;  %v178_v21 = vmul.f32 %v176_v18, %v162_v56  ;;  %v307_v22 = vsub.f32 2.0, %v305_v19 }
 0x2e0   :  { %v310_v23 = vmul.f32 %v308_v20, %v294_v59 }
 0x2e1   :  { %v180_v24 = vmul.f32 %v178_v21, %v158_v42  ;;  %v309_v25 = vmul.f32 %v385_v15, %v307_v22 }
 0x2e2   :  { %v312_v26 = vmul.f32 %v310_v23, %v290_v45 }
 0x2e3   :  { %182 = vst.msk [vmem:[%s516_s3 + $0x8] sm:$0xff] %vm130_vm1, %v180_v24  ;;  %v311_v27 = vmul.f32 %v309_v25, %v295_v63 }
 0x2e4   :  { %331 = vst.msk [vmem:[%s516_s3 + $0x10] sm:$0xff] %vm130_vm1, %v312_v26 }
 0x2e5   :  { %v313_v28 = vmul.f32 %v311_v27, %v291_v49 }
 0x2e7   :  { %332 = vst.msk [vmem:[%s516_s3 + $0x18] sm:$0xff] %vm130_vm1, %v313_v28 }
 0x2e8   :  { %321 = vsyncpa [#allocation3], 1 }
 0x2e9   :  { %322 = vsyncpa [#allocation5], 1 }

</bundles_post_ra>
